<compile_context>
chip_gen: v6e
topology: v6e:2x2x1
jax: 0.10.0
libtpu: 0.0.40
codegen_flags: <defaults>
</compile_context>

<pallas_src>
import functools

import jax
import jax.numpy as jnp
from jax.experimental import pallas as pl
from jax.experimental.pallas import tpu as pltpu

LANE = 128  # TPU lane width; feature dims padded to this for lane-dense MXU/stores.


def _round_up(n, m):
    return (n + m - 1) // m * m


def _bn_lrelu(h, gamma, beta, eps, neg_slope):
    """One-pass training-mode BatchNorm (stats over node axis) + leaky_relu."""
    mean = jnp.mean(h, axis=0, keepdims=True)
    msq = jnp.mean(h * h, axis=0, keepdims=True)
    var = msq - mean * mean                        # biased variance
    scale = gamma * jax.lax.rsqrt(var + eps)       # rsqrt -> EUP (free slot)
    shift = beta - mean * scale
    y = h * scale + shift
    return jnp.maximum(y, neg_slope * y)           # leaky_relu (neg_slope < 1)


def _dense_layer_kernel(x_ref, a_ref, w1_ref, g1_ref, bt1_ref,
                        w2_ref, g2_ref, bt2_ref, o_ref,
                        *, h_p, f2_p, eps, neg_slope):
    x = x_ref[...]                                  # [N, F1p] bf16
    a = a_ref[...]                                  # [N, N]  bf16

    # ----- layer 1: GraphConv (reordered: A @ (x @ W_rel) + x @ W_root) -----
    # W1 = [W_rel | W_root] fused -> one lane-wide MXU matmul.
    xw = jnp.dot(x, w1_ref[...], preferred_element_type=jnp.float32)     # [N, 2*Hp]
    h1 = jnp.dot(a, xw[:, :h_p].astype(jnp.bfloat16),
                 preferred_element_type=jnp.float32) + xw[:, h_p:]        # [N, Hp]
    # conv bias folded away: training-mode BN mean-subtraction cancels it exactly.
    act1 = _bn_lrelu(h1, g1_ref[...], bt1_ref[...], eps, neg_slope)       # f32

    # ----- layer 2 (intermediate stays in VMEM / vregs) -----
    x2 = act1.astype(jnp.bfloat16)                                        # [N, Hp]
    xw2 = jnp.dot(x2, w2_ref[...], preferred_element_type=jnp.float32)    # [N, 2*F2p]
    h2 = jnp.dot(a, xw2[:, :f2_p].astype(jnp.bfloat16),
                 preferred_element_type=jnp.float32) + xw2[:, f2_p:]      # [N, F2p]
    act2 = _bn_lrelu(h2, g2_ref[...], bt2_ref[...], eps, neg_slope)

    o_ref[...] = act2.astype(o_ref.dtype)


def dense_layer_forward(x, adj, params, *, eps=1e-5, neg_slope=0.1):
    """Fused DenseLayer forward: concat'd features -> conv1 block -> conv2 block."""
    n, f1 = x.shape
    f1_p, h_p, f2_p, fout = (params["f1_p"], params["h_p"],
                             params["f2_p"], params["fout"])

    # Pad features to a lane-dense slab; cast MXU operands to bf16.
    x_p = jnp.zeros((n, f1_p), jnp.bfloat16).at[:, :f1].set(x.astype(jnp.bfloat16))
    a_bf = adj.astype(jnp.bfloat16)

    kernel = functools.partial(_dense_layer_kernel, h_p=h_p, f2_p=f2_p,
                               eps=eps, neg_slope=neg_slope)
    out_p = pl.pallas_call(
        kernel,
        out_shape=jax.ShapeDtypeStruct((n, f2_p), jnp.float32),
        grid=(1,),                                   # whole problem fits in VMEM
        in_specs=[
            pl.BlockSpec((n, f1_p), lambda i: (0, 0)),        # x (padded, bf16)
            pl.BlockSpec((n, n), lambda i: (0, 0)),           # adjacency (bf16)
            pl.BlockSpec((f1_p, 2 * h_p), lambda i: (0, 0)),  # [W_rel|W_root] 1
            pl.BlockSpec((1, h_p), lambda i: (0, 0)),         # gamma1
            pl.BlockSpec((1, h_p), lambda i: (0, 0)),         # beta1
            pl.BlockSpec((h_p, 2 * f2_p), lambda i: (0, 0)),  # [W_rel|W_root] 2
            pl.BlockSpec((1, f2_p), lambda i: (0, 0)),        # gamma2
            pl.BlockSpec((1, f2_p), lambda i: (0, 0)),        # beta2
        ],
        out_specs=pl.BlockSpec((n, f2_p), lambda i: (0, 0)),
        compiler_params=pltpu.CompilerParams(
            dimension_semantics=("arbitrary",)),
    )(x_p, a_bf, params["w1"], params["g1"], params["bt1"],
      params["w2"], params["g2"], params["bt2"])
    return out_p[:, :fout]                           # trim lane padding once, at the end


class DenseLayerPallas:
    """DenseLayer(num_input_features, growth_rate, batch_size) with one fused kernel."""

    def __init__(self, num_input_features, growth_rate=32, batch_size=4,
                 key=jax.random.PRNGKey(0)):
        hidden = int(growth_rate * batch_size)
        f1, h, f2 = num_input_features, hidden, growth_rate
        f1_p, h_p, f2_p = (_round_up(d, LANE) for d in (f1, h, f2))

        ks = jax.random.split(key, 6)

        def uni(kk, shape, fan_in):
            bound = 1.0 / jnp.sqrt(jnp.float32(fan_in))
            return jax.random.uniform(kk, shape, jnp.float32, -bound, bound)

        w_rel1, w_root1 = uni(ks[0], (f1, h), f1), uni(ks[1], (f1, h), f1)
        b1 = uni(ks[2], (1, h), f1)   # cancelled by training-mode BN; kept for reference
        w_rel2, w_root2 = uni(ks[3], (h, f2), h), uni(ks[4], (h, f2), h)
        b2 = uni(ks[5], (1, f2), h)

        def pack(w_rel, w_root, fin, fin_p, fo, fo_p):
            """Zero-padded, fused [W_rel | W_root] in bf16, laid out lane-dense."""
            w = jnp.zeros((fin_p, 2 * fo_p), jnp.bfloat16)
            w = w.at[:fin, :fo].set(w_rel.astype(jnp.bfloat16))
            w = w.at[:fin, fo_p:fo_p + fo].set(w_root.astype(jnp.bfloat16))
            return w

        self.params = dict(
            f1_p=f1_p, h_p=h_p, f2_p=f2_p, fout=f2,
            w1=pack(w_rel1, w_root1, f1, f1_p, h, h_p),
            g1=jnp.zeros((1, h_p), jnp.float32).at[:, :h].set(1.0),
            bt1=jnp.zeros((1, h_p), jnp.float32),
            w2=pack(w_rel2, w_root2, h, h_p, f2, f2_p),
            g2=jnp.zeros((1, f2_p), jnp.float32).at[:, :f2].set(1.0),
            bt2=jnp.zeros((1, f2_p), jnp.float32),
        )
        # f32 originals kept only for the pure-JAX reference check in __main__.
        self.ref = dict(w_rel1=w_rel1, w_root1=w_root1, b1=b1,
                        w_rel2=w_rel2, w_root2=w_root2, b2=b2)

    def __call__(self, x, adj):
        if not isinstance(x, (list, tuple)):
            x = [x]
        x = jnp.concatenate(x, axis=1)               # torch.cat(x, 1)
        return dense_layer_forward(x, adj, self.params)


def _ref_graphconv_bn_lrelu(x, adj, w_rel, w_root, b, eps=1e-5, ns=0.1):
    """Pure-JAX f32 reference with the original matmul order + bias."""
    h = adj @ x @ w_rel + x @ w_root + b
    mean = h.mean(axis=0, keepdims=True)
    var = ((h - mean) ** 2).mean(axis=0, keepdims=True)
    y = (h - mean) / jnp.sqrt(var + eps)             # gamma=1, beta=0
    return jnp.where(y >= 0, y, ns * y)


if __name__ == "__main__":
    key = jax.random.PRNGKey(0)
    k_x, k_params = jax.random.split(key)

    # Small synthetic batched graph: 32 nodes, 16 input features per node.
    num_nodes = 32
    num_input_features = 16
    growth_rate = 8
    batch_size = 4

    x = jax.random.normal(k_x, (num_nodes, num_input_features), jnp.float32)

    # Ring graph adjacency (each node receives from its two neighbors).
    idx = jnp.arange(num_nodes)
    adj = (jnp.zeros((num_nodes, num_nodes), jnp.float32)
           .at[idx, (idx + 1) % num_nodes].set(1.0)
           .at[idx, (idx - 1) % num_nodes].set(1.0))

    layer = DenseLayerPallas(num_input_features, growth_rate, batch_size,
                             key=k_params)
    out = jax.block_until_ready(layer(x, adj))
    assert out.shape == (num_nodes, growth_rate), out.shape
    assert jnp.all(jnp.isfinite(out))

    # Cross-check against the pure-JAX f32 reference (bias included there; it
    # cancels under training-mode BN).  Loose tolerance accounts for bf16 MXU.
    r = layer.ref
    h1_ref = _ref_graphconv_bn_lrelu(x, adj, r["w_rel1"], r["w_root1"], r["b1"])
    out_ref = _ref_graphconv_bn_lrelu(h1_ref, adj, r["w_rel2"], r["w_root2"], r["b2"])
    max_err = float(jnp.max(jnp.abs(out - out_ref)))
    assert max_err < 0.1, max_err

    print("KERNEL_OK")
</pallas_src>

<mosaic_0001>
module attributes {stable_mosaic.version = 11 : i64} {
  func.func @_dense_layer_kernel(%arg0: i32, %arg1: memref<32x128xbf16, #tpu.memory_space<vmem>>, %arg2: memref<32x32xbf16, #tpu.memory_space<vmem>>, %arg3: memref<128x256xbf16, #tpu.memory_space<vmem>>, %arg4: memref<1x128xf32, #tpu.memory_space<vmem>>, %arg5: memref<1x128xf32, #tpu.memory_space<vmem>>, %arg6: memref<128x256xbf16, #tpu.memory_space<vmem>>, %arg7: memref<1x128xf32, #tpu.memory_space<vmem>>, %arg8: memref<1x128xf32, #tpu.memory_space<vmem>>, %arg9: memref<32x128xf32, #tpu.memory_space<vmem>>) attributes {dimension_semantics = [#tpu.dimension_semantics<arbitrary>], iteration_bounds = array<i64: 1>, scalar_prefetch = 0 : i64, scratch_operands = 0 : i64, tpu.core_type = #tpu.core_type<tc>, window_params = [{pipeline_mode = #tpu.pipeline_mode<synchronous>, transform_indices = @transform_0, window_bounds = array<i64: 32, 128>}, {pipeline_mode = #tpu.pipeline_mode<synchronous>, transform_indices = @transform_1, window_bounds = array<i64: 32, 32>}, {pipeline_mode = #tpu.pipeline_mode<synchronous>, transform_indices = @transform_2, window_bounds = array<i64: 128, 256>}, {pipeline_mode = #tpu.pipeline_mode<synchronous>, transform_indices = @transform_3, window_bounds = array<i64: 1, 128>}, {pipeline_mode = #tpu.pipeline_mode<synchronous>, transform_indices = @transform_4, window_bounds = array<i64: 1, 128>}, {pipeline_mode = #tpu.pipeline_mode<synchronous>, transform_indices = @transform_5, window_bounds = array<i64: 128, 256>}, {pipeline_mode = #tpu.pipeline_mode<synchronous>, transform_indices = @transform_6, window_bounds = array<i64: 1, 128>}, {pipeline_mode = #tpu.pipeline_mode<synchronous>, transform_indices = @transform_7, window_bounds = array<i64: 1, 128>}, {pipeline_mode = #tpu.pipeline_mode<synchronous>, transform_indices = @transform_8, window_bounds = array<i64: 32, 128>}]} {
    %c0 = arith.constant 0 : index
    %c0_0 = arith.constant 0 : index
    %0 = vector.load %arg1[%c0, %c0_0] : memref<32x128xbf16, #tpu.memory_space<vmem>>, vector<32x128xbf16>
    %c0_1 = arith.constant 0 : index
    %c0_2 = arith.constant 0 : index
    %1 = vector.load %arg2[%c0_1, %c0_2] : memref<32x32xbf16, #tpu.memory_space<vmem>>, vector<32x32xbf16>
    %c0_3 = arith.constant 0 : index
    %c0_4 = arith.constant 0 : index
    %2 = vector.load %arg3[%c0_3, %c0_4] : memref<128x256xbf16, #tpu.memory_space<vmem>>, vector<128x256xbf16>
    %cst = arith.constant dense<0.000000e+00> : vector<32x256xf32>
    %3 = tpu.matmul %0, %2, %cst {dimension_numbers = #tpu.dot_dimension_numbers<[1], [0], [0], [1], [0, 0, 1, 1], [], []>} : vector<32x128xbf16>, vector<128x256xbf16>, vector<32x256xf32> -> vector<32x256xf32>
    %4 = vector.extract_strided_slice %3 {offsets = [0, 0], sizes = [32, 128], strides = [1, 1]} : vector<32x256xf32> to vector<32x128xf32>
    %5 = arith.truncf %4 : vector<32x128xf32> to vector<32x128xbf16>
    %cst_5 = arith.constant dense<0.000000e+00> : vector<32x128xf32>
    %6 = tpu.matmul %1, %5, %cst_5 {dimension_numbers = #tpu.dot_dimension_numbers<[1], [0], [0], [1], [0, 0, 1, 1], [], []>} : vector<32x32xbf16>, vector<32x128xbf16>, vector<32x128xf32> -> vector<32x128xf32>
    %7 = vector.extract_strided_slice %3 {offsets = [0, 128], sizes = [32, 128], strides = [1, 1]} : vector<32x256xf32> to vector<32x128xf32>
    %8 = arith.addf %6, %7 : vector<32x128xf32>
    %c0_6 = arith.constant 0 : index
    %c0_7 = arith.constant 0 : index
    %9 = vector.load %arg4[%c0_6, %c0_7] : memref<1x128xf32, #tpu.memory_space<vmem>>, vector<1x128xf32>
    %c0_8 = arith.constant 0 : index
    %c0_9 = arith.constant 0 : index
    %10 = vector.load %arg5[%c0_8, %c0_9] : memref<1x128xf32, #tpu.memory_space<vmem>>, vector<1x128xf32>
    %cst_10 = arith.constant dense<0.000000e+00> : vector<128xf32>
    %11 = vector.multi_reduction <add>, %8, %cst_10 [0] : vector<32x128xf32> to vector<128xf32>
    %12 = vector.shape_cast %11 : vector<128xf32> to vector<1x128xf32>
    %cst_11 = arith.constant 3.200000e+01 : f32
    %13 = vector.broadcast %cst_11 : f32 to vector<1x128xf32>
    %14 = arith.divf %12, %13 : vector<1x128xf32>
    %15 = arith.mulf %8, %8 : vector<32x128xf32>
    %cst_12 = arith.constant dense<0.000000e+00> : vector<128xf32>
    %16 = vector.multi_reduction <add>, %15, %cst_12 [0] : vector<32x128xf32> to vector<128xf32>
    %17 = vector.shape_cast %16 : vector<128xf32> to vector<1x128xf32>
    %cst_13 = arith.constant 3.200000e+01 : f32
    %18 = vector.broadcast %cst_13 : f32 to vector<1x128xf32>
    %19 = arith.divf %17, %18 : vector<1x128xf32>
    %20 = arith.mulf %14, %14 : vector<1x128xf32>
    %21 = arith.subf %19, %20 : vector<1x128xf32>
    %cst_14 = arith.constant 9.99999974E-6 : f32
    %22 = vector.broadcast %cst_14 : f32 to vector<1x128xf32>
    %23 = arith.addf %21, %22 : vector<1x128xf32>
    %24 = math.rsqrt %23 : vector<1x128xf32>
    %25 = arith.mulf %9, %24 : vector<1x128xf32>
    %26 = arith.mulf %14, %25 : vector<1x128xf32>
    %27 = arith.subf %10, %26 : vector<1x128xf32>
    %28 = vector.broadcast %25 : vector<1x128xf32> to vector<32x128xf32>
    %29 = arith.mulf %8, %28 : vector<32x128xf32>
    %30 = vector.broadcast %27 : vector<1x128xf32> to vector<32x128xf32>
    %31 = arith.addf %29, %30 : vector<32x128xf32>
    %cst_15 = arith.constant 1.000000e-01 : f32
    %32 = vector.broadcast %cst_15 : f32 to vector<32x128xf32>
    %33 = arith.mulf %32, %31 : vector<32x128xf32>
    %34 = arith.maximumf %31, %33 : vector<32x128xf32>
    %35 = arith.truncf %34 : vector<32x128xf32> to vector<32x128xbf16>
    %c0_16 = arith.constant 0 : index
    %c0_17 = arith.constant 0 : index
    %36 = vector.load %arg6[%c0_16, %c0_17] : memref<128x256xbf16, #tpu.memory_space<vmem>>, vector<128x256xbf16>
    %cst_18 = arith.constant dense<0.000000e+00> : vector<32x256xf32>
    %37 = tpu.matmul %35, %36, %cst_18 {dimension_numbers = #tpu.dot_dimension_numbers<[1], [0], [0], [1], [0, 0, 1, 1], [], []>} : vector<32x128xbf16>, vector<128x256xbf16>, vector<32x256xf32> -> vector<32x256xf32>
    %38 = vector.extract_strided_slice %37 {offsets = [0, 0], sizes = [32, 128], strides = [1, 1]} : vector<32x256xf32> to vector<32x128xf32>
    %39 = arith.truncf %38 : vector<32x128xf32> to vector<32x128xbf16>
    %cst_19 = arith.constant dense<0.000000e+00> : vector<32x128xf32>
    %40 = tpu.matmul %1, %39, %cst_19 {dimension_numbers = #tpu.dot_dimension_numbers<[1], [0], [0], [1], [0, 0, 1, 1], [], []>} : vector<32x32xbf16>, vector<32x128xbf16>, vector<32x128xf32> -> vector<32x128xf32>
    %41 = vector.extract_strided_slice %37 {offsets = [0, 128], sizes = [32, 128], strides = [1, 1]} : vector<32x256xf32> to vector<32x128xf32>
    %42 = arith.addf %40, %41 : vector<32x128xf32>
    %c0_20 = arith.constant 0 : index
    %c0_21 = arith.constant 0 : index
    %43 = vector.load %arg7[%c0_20, %c0_21] : memref<1x128xf32, #tpu.memory_space<vmem>>, vector<1x128xf32>
    %c0_22 = arith.constant 0 : index
    %c0_23 = arith.constant 0 : index
    %44 = vector.load %arg8[%c0_22, %c0_23] : memref<1x128xf32, #tpu.memory_space<vmem>>, vector<1x128xf32>
    %cst_24 = arith.constant dense<0.000000e+00> : vector<128xf32>
    %45 = vector.multi_reduction <add>, %42, %cst_24 [0] : vector<32x128xf32> to vector<128xf32>
    %46 = vector.shape_cast %45 : vector<128xf32> to vector<1x128xf32>
    %cst_25 = arith.constant 3.200000e+01 : f32
    %47 = vector.broadcast %cst_25 : f32 to vector<1x128xf32>
    %48 = arith.divf %46, %47 : vector<1x128xf32>
    %49 = arith.mulf %42, %42 : vector<32x128xf32>
    %cst_26 = arith.constant dense<0.000000e+00> : vector<128xf32>
    %50 = vector.multi_reduction <add>, %49, %cst_26 [0] : vector<32x128xf32> to vector<128xf32>
    %51 = vector.shape_cast %50 : vector<128xf32> to vector<1x128xf32>
    %cst_27 = arith.constant 3.200000e+01 : f32
    %52 = vector.broadcast %cst_27 : f32 to vector<1x128xf32>
    %53 = arith.divf %51, %52 : vector<1x128xf32>
    %54 = arith.mulf %48, %48 : vector<1x128xf32>
    %55 = arith.subf %53, %54 : vector<1x128xf32>
    %cst_28 = arith.constant 9.99999974E-6 : f32
    %56 = vector.broadcast %cst_28 : f32 to vector<1x128xf32>
    %57 = arith.addf %55, %56 : vector<1x128xf32>
    %58 = math.rsqrt %57 : vector<1x128xf32>
    %59 = arith.mulf %43, %58 : vector<1x128xf32>
    %60 = arith.mulf %48, %59 : vector<1x128xf32>
    %61 = arith.subf %44, %60 : vector<1x128xf32>
    %62 = vector.broadcast %59 : vector<1x128xf32> to vector<32x128xf32>
    %63 = arith.mulf %42, %62 : vector<32x128xf32>
    %64 = vector.broadcast %61 : vector<1x128xf32> to vector<32x128xf32>
    %65 = arith.addf %63, %64 : vector<32x128xf32>
    %cst_29 = arith.constant 1.000000e-01 : f32
    %66 = vector.broadcast %cst_29 : f32 to vector<32x128xf32>
    %67 = arith.mulf %66, %65 : vector<32x128xf32>
    %68 = arith.maximumf %65, %67 : vector<32x128xf32>
    %c0_30 = arith.constant 0 : index
    %c0_31 = arith.constant 0 : index
    %69 = vector.load %arg9[%c0_30, %c0_31] : memref<32x128xf32, #tpu.memory_space<vmem>>, vector<32x128xf32>
    tpu.vector_store %arg9[%c0_30, %c0_31], %68 {strides = array<i32>} : memref<32x128xf32, #tpu.memory_space<vmem>>, vector<32x128xf32>,
    return
  }
  func.func @transform_0(%arg0: i32) -> (i32, i32) {
    %c0_i32 = arith.constant 0 : i32
    %c0_i32_0 = arith.constant 0 : i32
    %c0_i32_1 = arith.constant 0 : i32
    return %c0_i32, %c0_i32_0 : i32, i32
  }
  func.func @transform_1(%arg0: i32) -> (i32, i32) {
    %c0_i32 = arith.constant 0 : i32
    %c0_i32_0 = arith.constant 0 : i32
    %c0_i32_1 = arith.constant 0 : i32
    return %c0_i32, %c0_i32_0 : i32, i32
  }
  func.func @transform_2(%arg0: i32) -> (i32, i32) {
    %c0_i32 = arith.constant 0 : i32
    %c0_i32_0 = arith.constant 0 : i32
    %c0_i32_1 = arith.constant 0 : i32
    return %c0_i32, %c0_i32_0 : i32, i32
  }
  func.func @transform_3(%arg0: i32) -> (i32, i32) {
    %c0_i32 = arith.constant 0 : i32
    %c0_i32_0 = arith.constant 0 : i32
    %c0_i32_1 = arith.constant 0 : i32
    return %c0_i32, %c0_i32_0 : i32, i32
  }
  func.func @transform_4(%arg0: i32) -> (i32, i32) {
    %c0_i32 = arith.constant 0 : i32
    %c0_i32_0 = arith.constant 0 : i32
    %c0_i32_1 = arith.constant 0 : i32
    return %c0_i32, %c0_i32_0 : i32, i32
  }
  func.func @transform_5(%arg0: i32) -> (i32, i32) {
    %c0_i32 = arith.constant 0 : i32
    %c0_i32_0 = arith.constant 0 : i32
    %c0_i32_1 = arith.constant 0 : i32
    return %c0_i32, %c0_i32_0 : i32, i32
  }
  func.func @transform_6(%arg0: i32) -> (i32, i32) {
    %c0_i32 = arith.constant 0 : i32
    %c0_i32_0 = arith.constant 0 : i32
    %c0_i32_1 = arith.constant 0 : i32
    return %c0_i32, %c0_i32_0 : i32, i32
  }
  func.func @transform_7(%arg0: i32) -> (i32, i32) {
    %c0_i32 = arith.constant 0 : i32
    %c0_i32_0 = arith.constant 0 : i32
    %c0_i32_1 = arith.constant 0 : i32
    return %c0_i32, %c0_i32_0 : i32, i32
  }
  func.func @transform_8(%arg0: i32) -> (i32, i32) {
    %c0_i32 = arith.constant 0 : i32
    %c0_i32_0 = arith.constant 0 : i32
    %c0_i32_1 = arith.constant 0 : i32
    return %c0_i32, %c0_i32_0 : i32, i32
  }
}

</mosaic_0001>

<bundles_post_ra>
// kernel: tpu_custom_call.1
= control target key start
LH: loop header
LB: loop body
LE: loop exit
PB: predicated region body
PF: predicated region fallthrough
CT: control target
= control target key end

     0   :  { %13 = vsyncpa [#allocation3], 0  ;;  %s1018_s0 = inlined_call_operand.hbm [shape: bf16[32,128], index: 0, kind: input, shape index: {}]   ;;  %s1019_s1 = inlined_call_operand.hbm [shape: bf16[32,32], index: 1, kind: input, shape index: {}]   ;;  %s1020_s2 = inlined_call_operand.hbm [shape: bf16[128,256], index: 2, kind: input, shape index: {}]   ;;  %s1021_s3 = inlined_call_operand.vmem [shape: f32[1,128], index: 3, kind: input, shape index: {}]   ;;  %s1022_s4 = inlined_call_operand.vmem [shape: f32[1,128], index: 4, kind: input, shape index: {}]   ;;  %s1023_s5 = inlined_call_operand.hbm [shape: bf16[128,256], index: 5, kind: input, shape index: {}]   ;;  %s1024_s6 = inlined_call_operand.vmem [shape: f32[1,128], index: 6, kind: input, shape index: {}]   ;;  %s1025_s7 = inlined_call_operand.vmem [shape: f32[1,128], index: 7, kind: input, shape index: {}]   ;;  %s1026_s8 = inlined_call_operand.hbm [shape: f32[32,128], index: 8, kind: output, shape index: {}]  }
   0x1   :  { %14 = vsyncpa [#allocation6], 0 }
   0x2   :  { %15 = vsyncpa [#allocation9], 0 }
   0x3   :  { %16 = vsyncpa [#allocation4], 0  ;;  %s909_s27 = smov [#allocation5]   ;;  %s910_s29 = smov [#allocation2]  }
   0x4   :  { %s34_s28 = sshll.u32 %s909_s27, 4  ;;  %s22_s30 = sshll.u32 %s910_s29, 4  ;;  %s35_s28 = int_to_ptr.vmem [resolvable:$true] %s34_s28  ;;  %s23_s30 = int_to_ptr.vmem [resolvable:$true] %s22_s30 }
   0x5   :  { %s809_s9 = scalar_lea.vmem %s35_s28, 256  ;;  %p814_p1 = scmp.lt.s32.totalorder %s35_s28, %s35_s28 }
   0x6   :  { %p810_p0 = scmp.ne.s32.totalorder %s35_s28, %s809_s9  ;;  %p815_p2 = scmp.lt.s32.totalorder %s809_s9, %s809_s9 }
   0x8   :  { %p816_p3 = por %p815_p2, %p814_p1 }
   0xa   :  { %p817_p4 = pnand %p816_p3, %p810_p0 }
   0xc   :  { %820 = shalt.err (!%p817_p4)
}
   0xd   :  { %s911_s10 = smov 64   ;;  %s912_s11 = smov 4  }
   0xe   :  { %40 = dma.hbm_to_vmem [thread:$0]  %s1019_s1, 256, %s35_s28, [#allocation6], %s911_s10, %s911_s10, %s912_s11  }
   0xf   :  { %s829_s14 = scalar_lea.vmem %s23_s30, 256  ;;  %p834_p6 = scmp.lt.s32.totalorder %s23_s30, %s23_s30 }
  0x10   :  { %p830_p5 = scmp.ne.s32.totalorder %s23_s30, %s829_s14  ;;  %p835_p7 = scmp.lt.s32.totalorder %s829_s14, %s829_s14 }
  0x12   :  { %p836_p8 = por %p835_p7, %p834_p6 }
  0x14   :  { %p837_p9 = pnand %p836_p8, %p830_p5 }
  0x16   :  { %840 = shalt.err (!%p837_p9)
}
  0x17   :  { %28 = dma.hbm_to_vmem [thread:$0]  %s1018_s0, 256, %s23_s30, [#allocation3], %s911_s10, %s911_s10, %s912_s11  }
  0x18   :  { %s913_s17 = smov [#allocation7]  }
  0x19   :  { %s46_s18 = sshll.u32 %s913_s17, 4  ;;  %s47_s18 = int_to_ptr.vmem [resolvable:$true] %s46_s18 }
  0x1a   :  { %s849_s19 = scalar_lea.vmem %s47_s18, 2048  ;;  %p854_p11 = scmp.lt.s32.totalorder %s47_s18, %s47_s18 }
  0x1b   :  { %p850_p10 = scmp.ne.s32.totalorder %s47_s18, %s849_s19  ;;  %p855_p12 = scmp.lt.s32.totalorder %s849_s19, %s849_s19 }
  0x1d   :  { %p856_p13 = por %p855_p12, %p854_p11 }
  0x1f   :  { %p857_p0 = pnand %p856_p13, %p850_p10 }
  0x21   :  { %860 = shalt.err (!%p857_p0)
}
  0x22   :  { %s914_s1 = smov 128   ;;  %s915_s20 = smov 8  }
  0x23   :  { %52 = dma.hbm_to_vmem [thread:$0]  %s1020_s2, 2048, %s47_s18, [#allocation6], %s914_s1, %s914_s1, %s915_s20  }
  0x24   :  { %s916_s0 = smov [#allocation8]  }
  0x25   :  { %s62_s23 = sshll.u32 %s916_s0, 4  ;;  %s63_s23 = int_to_ptr.vmem [resolvable:$true] %s62_s23 }
  0x26   :  { %s869_s24 = scalar_lea.vmem %s63_s23, 2048  ;;  %p874_p2 = scmp.lt.s32.totalorder %s63_s23, %s63_s23 }
  0x27   :  { %p870_p1 = scmp.ne.s32.totalorder %s63_s23, %s869_s24  ;;  %p875_p3 = scmp.lt.s32.totalorder %s869_s24, %s869_s24 }
  0x29   :  { %p876_p4 = por %p875_p3, %p874_p2 }
  0x2b   :  { %p877_p5 = pnand %p876_p4, %p870_p1 }
  0x2d   :  { %880 = shalt.err (!%p877_p5)
}
  0x2e   :  { %68 = dma.hbm_to_vmem [thread:$0]  %s1023_s5, 2048, %s63_s23, [#allocation9], %s914_s1, %s914_s1, %s915_s20  }
  0x2f   :  { %901 = dma.done.wait [#allocation3], 256  }
  0x30   :  { %902 = vsyncadd [#allocation3], 4294967040 }
  0x31   :  { %903 = dma.done.wait [#allocation6], 2304  }
  0x32   :  { %904 = vsyncadd [#allocation6], 4294964992 }
  0x33   :  { %905 = dma.done.wait [#allocation9], 2048  }
  0x34   :  { %906 = vsyncadd [#allocation9], 4294965248  ;;  %v917_v0 = vmov 0   ;;  %v745_v1 = vld [vmem:[#allocation7 + $0x74] ss:$8 sps:$4 sm:$0xff]   ;;  %v769_v17 = vld [vmem:[#allocation2] sm:$0xff]  }
  0x35   :  { %234 = vmatprep.mubr.bf16.mxu0 %v917_v0  ;;  %v747_v2 = vld [vmem:[#allocation7 + $0x70] ss:$8 sps:$4 sm:$0xff]   ;;  %202 = vmatprep.subr.bf16.mxu0 %v745_v1  ;;  %v748_v3 = vld [vmem:[#allocation7 + $0x64] ss:$8 sps:$4 sm:$0xff]   ;;  %v750_v4 = vld [vmem:[#allocation7 + $0x60] ss:$8 sps:$4 sm:$0xff]  }
  0x36   :  { %203 = vmatpush1.bf16.msra.mxu0 %v747_v2  ;;  %v751_v5 = vld [vmem:[#allocation7 + $0x54] ss:$8 sps:$4 sm:$0xff]   ;;  %v753_v6 = vld [vmem:[#allocation7 + $0x50] ss:$8 sps:$4 sm:$0xff]   ;;  %v754_v7 = vld [vmem:[#allocation7 + $0x44] ss:$8 sps:$4 sm:$0xff]  }
  0x37   :  { %204 = vmatprep.subr.bf16.mxu0 %v748_v3  ;;  %v756_v8 = vld [vmem:[#allocation7 + $0x40] ss:$8 sps:$4 sm:$0xff]   ;;  %v757_v9 = vld [vmem:[#allocation7 + $0x34] ss:$8 sps:$4 sm:$0xff]   ;;  %v759_v10 = vld [vmem:[#allocation7 + $0x30] ss:$8 sps:$4 sm:$0xff]  }
  0x38   :  { %v760_v11 = vld [vmem:[#allocation7 + $0x24] ss:$8 sps:$4 sm:$0xff]   ;;  %v762_v12 = vld [vmem:[#allocation7 + $0x20] ss:$8 sps:$4 sm:$0xff]   ;;  %v763_v13 = vld [vmem:[#allocation7 + $0x14] ss:$8 sps:$4 sm:$0xff]  }
  0x39   :  { %v765_v14 = vld [vmem:[#allocation7 + $0x10] ss:$8 sps:$4 sm:$0xff]   ;;  %v766_v15 = vld [vmem:[#allocation7 + $0x4] ss:$8 sps:$4 sm:$0xff]   ;;  %v768_v16 = vld [vmem:[#allocation7] ss:$8 sps:$4 sm:$0xff]  }
  0x3a   :  { %205 = vmatpush1.bf16.msra.mxu0 %v750_v4  ;;  %v770_v18 = vld [vmem:[#allocation2 + $0x8] sm:$0xff]   ;;  %v771_v19 = vld [vmem:[#allocation5] sm:$0xff]   ;;  %vm267_vm0 = vcmask 261120   ;;  %v986_v29 = vld [vmem:[#allocation5 + $0x8] sm:$0xff]  }
  0x3b   :  { %206 = vmatprep.subr.bf16.mxu0 %v751_v5  ;;  %723 = vmatprep.mubr.msk.bf16.mxu1 %vm267_vm0, %v771_v19  ;;  %v775_v30 = vld [vmem:[#allocation8 + $0x74] ss:$8 sps:$4 sm:$0xff]   ;;  %v773_v31 = vld [vmem:[#allocation8 + $0x70] ss:$8 sps:$4 sm:$0xff]   ;;  %v778_v32 = vld [vmem:[#allocation8 + $0x64] ss:$8 sps:$4 sm:$0xff]  }
  0x3c   :  { %v776_v33 = vld [vmem:[#allocation8 + $0x60] ss:$8 sps:$4 sm:$0xff]   ;;  %v781_v34 = vld [vmem:[#allocation8 + $0x54] ss:$8 sps:$4 sm:$0xff]   ;;  %v779_v35 = vld [vmem:[#allocation8 + $0x50] ss:$8 sps:$4 sm:$0xff]  }
  0x3d   :  { %v784_v36 = vld [vmem:[#allocation8 + $0x44] ss:$8 sps:$4 sm:$0xff]   ;;  %v782_v37 = vld [vmem:[#allocation8 + $0x40] ss:$8 sps:$4 sm:$0xff]   ;;  %v787_v38 = vld [vmem:[#allocation8 + $0x34] ss:$8 sps:$4 sm:$0xff]  }
  0x3e   :  { %207 = vmatpush1.bf16.msra.mxu0 %v753_v6  ;;  %v785_v39 = vld [vmem:[#allocation8 + $0x30] ss:$8 sps:$4 sm:$0xff]   ;;  %v790_v40 = vld [vmem:[#allocation8 + $0x24] ss:$8 sps:$4 sm:$0xff]   ;;  %v788_v41 = vld [vmem:[#allocation8 + $0x20] ss:$8 sps:$4 sm:$0xff]  }
  0x3f   :  { %208 = vmatprep.subr.bf16.mxu0 %v754_v7  ;;  %v793_v42 = vld [vmem:[#allocation8 + $0x14] ss:$8 sps:$4 sm:$0xff]   ;;  %v791_v43 = vld [vmem:[#allocation8 + $0x10] ss:$8 sps:$4 sm:$0xff]   ;;  %v796_v44 = vld [vmem:[#allocation8 + $0x4] ss:$8 sps:$4 sm:$0xff]  }
  0x40   :  { %v794_v45 = vld [vmem:[#allocation8] ss:$8 sps:$4 sm:$0xff]  }
  0x42   :  { %209 = vmatpush1.bf16.msra.mxu0 %v756_v8 }
  0x43   :  { %210 = vmatprep.subr.bf16.mxu0 %v757_v9 }
  0x46   :  { %211 = vmatpush1.bf16.msra.mxu0 %v759_v10 }
  0x47   :  { %212 = vmatprep.subr.bf16.mxu0 %v760_v11 }
  0x4a   :  { %213 = vmatpush1.bf16.msra.mxu0 %v762_v12 }
  0x4b   :  { %214 = vmatprep.subr.bf16.mxu0 %v763_v13 }
  0x4e   :  { %215 = vmatpush1.bf16.msra.mxu0 %v765_v14 }
  0x4f   :  { %216 = vmatprep.subr.bf16.mxu0 %v766_v15 }
  0x52   :  { %217 = vmatpush1.bf16.msra.mxu0 %v768_v16 }
  0x55   :  { %235 = vmatmul.mubr.bf16.vlgmr.msra.gmra.mxu0 %v769_v17 }
  0x56   :  { %244 = vmatprep.mubr.bf16.mxu0 %v917_v0 }
  0x5d   :  { %245 = vmatmul.mubr.bf16.gmra.mxu0 %v770_v18 }
  0x5e   :  { %731 = vmatprep.mubr.msk.bf16.mxu0 %vm267_vm0, %v771_v19  ;;  %v358_v19 = vlaneseq }
 0x115   :  { %v236_v20 = vpop.f32.mrf.mxu0 }
 0x117   :  { %v238_v21 = vpop.f32.mrf.mxu0 }
 0x119   :  { %v240_v22 = vpop.f32.mrf.mxu0 }
 0x11a   :  { %v255_v28 = vpack.c.bf16 %v240_v22, %v236_v20  ;;  %v359_v20 = vshrl.u32 %v358_v19, 7 }
 0x11b   :  { %v242_v23 = vpop.f32.mrf.mxu0 }
 0x11c   :  { %v994_v22 = vsub.s32 0, %v359_v20 }
 0x11d   :  { %v246_v24 = vpop.f32.mrf.mxu0 }
 0x11f   :  { %v248_v25 = vpop.f32.mrf.mxu0 }
 0x121   :  { %v250_v26 = vpop.f32.mrf.mxu0 }
 0x122   :  { %v256_v27 = vpack.c.bf16 %v250_v26, %v246_v24 }
 0x123   :  { %v252_v53 = vpop.f32.mrf.mxu0 }
 0x124   :  { %719 = vmatprep.subr.bf16.mxu1 %v256_v27 }
 0x125   :  { %720 = vmatpush3.bf16.msra.mxu1 %v256_v27 }
 0x126   :  { %721 = vmatprep.subr.bf16.mxu1 %v255_v28 }
 0x129   :  { %722 = vmatpush3.bf16.msra.mxu1 %v255_v28 }
 0x12a   :  { %483 = vmatprep.subr.bf16.mxu1 %v775_v30 }
 0x12c   :  { %724 = vmatmul.mubr.msk.bf16.vlgmr.msra.gmra.mxu1 %vm267_vm0, %v986_v29 }
 0x12d   :  { %515 = vmatprep.mubr.bf16.mxu1 %v917_v0  ;;  %484 = vmatpush1.bf16.msra.mxu1 %v773_v31 }
 0x12e   :  { %485 = vmatprep.subr.bf16.mxu1 %v778_v32 }
 0x131   :  { %486 = vmatpush1.bf16.msra.mxu1 %v776_v33 }
 0x132   :  { %487 = vmatprep.subr.bf16.mxu1 %v781_v34 }
 0x135   :  { %488 = vmatpush1.bf16.msra.mxu1 %v779_v35 }
 0x136   :  { %489 = vmatprep.subr.bf16.mxu1 %v784_v36 }
 0x139   :  { %490 = vmatpush1.bf16.msra.mxu1 %v782_v37 }
 0x13a   :  { %491 = vmatprep.subr.bf16.mxu1 %v787_v38 }
 0x13d   :  { %492 = vmatpush1.bf16.msra.mxu1 %v785_v39 }
 0x13e   :  { %493 = vmatprep.subr.bf16.mxu1 %v790_v40 }
 0x141   :  { %494 = vmatpush1.bf16.msra.mxu1 %v788_v41 }
 0x142   :  { %495 = vmatprep.subr.bf16.mxu1 %v793_v42 }
 0x145   :  { %496 = vmatpush1.bf16.msra.mxu1 %v791_v43 }
 0x146   :  { %497 = vmatprep.subr.bf16.mxu1 %v796_v44 }
 0x149   :  { %498 = vmatpush1.bf16.msra.mxu1 %v794_v45 }
 0x1ec   :  { %v725_v46 = vpop.f32.mrf.mxu1 }
 0x1ed   :  { %v317_v51 = vadd.f32 %v725_v46, %v248_v25  ;;  %v324_v25 = vld [vmem:[%s1022_s4] sm:$0x1] }
 0x1ee   :  { %v308_v47 = vpop.f32.mrf.mxu1 }
 0x1ef   :  { %v309_v49 = vadd.f32 %v308_v47, %v238_v21  ;;  %v338_v58 = vmul.f32 %v317_v51, %v317_v51  ;;  %v323_v21 = vld [vmem:[%s1021_s3] sm:$0x1] }
 0x1f0   :  { %v726_v48 = vpop.f32.mrf.mxu1 }
 0x1f1   :  { %v336_v54 = vmul.f32 %v309_v49, %v309_v49  ;;  %v320_v55 = vadd.f32 %v726_v48, %v252_v53 }
 0x1f2   :  { %v311_v50 = vpop.f32.mrf.mxu1 }
 0x1f3   :  { %v312_v52 = vadd.f32 %v311_v50, %v242_v23  ;;  %v339_v61 = vmul.f32 %v320_v55, %v320_v55 }
 0x1f5   :  { %v325_v56 = vadd.f32 %v312_v52, %v309_v49  ;;  %v337_v57 = vmul.f32 %v312_v52, %v312_v52 }
 0x1f7   :  { %v326_v59 = vadd.f32 %v325_v56, %v317_v51  ;;  %v340_v60 = vadd.f32 %v337_v57, %v336_v54 }
 0x1f9   :  { %v327_v62 = vadd.f32 %v326_v59, %v320_v55  ;;  %v341_v63 = vadd.f32 %v340_v60, %v338_v58 }
 0x1fb   :  { %v328_v1 = vrot.slane %v327_v62, 4  ;;  %v342_v2 = vadd.f32 %v341_v63, %v339_v61 }
 0x1fd   :  { %v329_v3 = vadd.f32 %v328_v1, %v327_v62  ;;  %v343_v4 = vrot.slane %v342_v2, 4 }
 0x1ff   :  { %v330_v5 = vrot.slane %v329_v3, 2  ;;  %v344_v6 = vadd.f32 %v343_v4, %v342_v2 }
 0x201   :  { %v331_v7 = vadd.f32 %v330_v5, %v329_v3  ;;  %v345_v8 = vrot.slane %v344_v6, 2 }
 0x203   :  { %v332_v9 = vrot.slane %v331_v7, 1  ;;  %v346_v10 = vadd.f32 %v345_v8, %v344_v6 }
 0x205   :  { %v333_v11 = vadd.f32 %v332_v9, %v331_v7  ;;  %v347_v12 = vrot.slane %v346_v10, 1 }
 0x207   :  { %v335_v13 = vmul.f32 0.03125, %v333_v11  ;;  %v348_v14 = vadd.f32 %v347_v12, %v346_v10 }
 0x209   :  { %v349_v15 = vmul.f32 0.03125, %v348_v14  ;;  %v350_v16 = vmul.f32 %v335_v13, %v335_v13 }
 0x20b   :  { %v351_v17 = vsub.f32 %v349_v15, %v350_v16 }
 0x20d   :  { %v352_v18 = vadd.f32 1e-05, %v351_v17 }
 0x20f   :  { %797 = vrsqrt.f32 %v352_v18 }
 0x21c   :  { %v798_v23 = vpop.eup %797 }
 0x21d   :  { %v354_v24 = vmul.f32 %v798_v23, %v323_v21 }
 0x21f   :  { %v355_v26 = vmul.f32 %v354_v24, %v335_v13  ;;  %v361_v27 = vrot.slane %v354_v24, %v994_v22 }
 0x221   :  { %v356_v28 = vsub.f32 %v324_v25, %v355_v26  ;;  %v364_v30 = vmul.f32 %v361_v27, %v312_v52  ;;  %v363_v32 = vmul.f32 %v361_v27, %v309_v49  ;;  %v365_v35 = vmul.f32 %v361_v27, %v317_v51 }
 0x222   :  { %v366_v36 = vmul.f32 %v361_v27, %v320_v55 }
 0x223   :  { %v371_v31 = vrot.slane %v356_v28, %v994_v22 }
 0x225   :  { %v374_v33 = vadd.f32 %v371_v31, %v364_v30  ;;  %v373_v34 = vadd.f32 %v371_v31, %v363_v32  ;;  %v375_v39 = vadd.f32 %v371_v31, %v365_v35  ;;  %v376_v40 = vadd.f32 %v371_v31, %v366_v36  ;;  %v587_v31 = vld [vmem:[%s1024_s6] sm:$0x1]  ;;  %s918_s6 = smov [#allocation10]  }
 0x226   :  { %s657_s9 = sshll.u32 %s918_s6, 4  ;;  %s658_s9 = int_to_ptr.vmem [resolvable:$true] %s657_s9 }
 0x227   :  { %v378_v37 = vmul.f32 0.1, %v374_v33  ;;  %v377_v38 = vmul.f32 0.1, %v373_v34  ;;  %v379_v44 = vmul.f32 0.1, %v375_v39  ;;  %p886_p7 = scmp.lt.s32.totalorder %s658_s9, %s658_s9 }
 0x228   :  { %v380_v45 = vmul.f32 0.1, %v376_v40 }
 0x229   :  { %v382_v41 = vmax.f32 %v374_v33, %v378_v37  ;;  %v381_v42 = vmax.f32 %v373_v34, %v377_v38  ;;  %v383_v46 = vmax.f32 %v375_v39, %v379_v44  ;;  %v588_v34 = vld [vmem:[%s1025_s7] sm:$0x1]  ;;  %s881_s7 = scalar_lea.vmem %s658_s9, 512 }
 0x22a   :  { %v384_v47 = vmax.f32 %v376_v40, %v380_v45  ;;  %p882_p6 = scmp.ne.s32.totalorder %s658_s9, %s881_s7  ;;  %p887_p8 = scmp.lt.s32.totalorder %s881_s7, %s881_s7 }
 0x22b   :  { %v385_v43 = vpack.c.bf16 %v382_v41, %v381_v42 }
 0x22c   :  { %v386_v48 = vpack.c.bf16 %v384_v47, %v383_v46  ;;  %p888_p9 = por %p887_p8, %p886_p7 }
 0x22d   :  { %516 = vmatmul.mubr.bf16.vlgmr.msra.gmra.mxu1 %v385_v43 }
 0x22e   :  { %525 = vmatprep.mubr.bf16.mxu1 %v917_v0  ;;  %p889_p10 = pnand %p888_p9, %p882_p6 }
 0x235   :  { %526 = vmatmul.mubr.bf16.gmra.mxu1 %v386_v48 }
 0x2ed   :  { %v517_v49 = vpop.f32.mrf.mxu1 }
 0x2ef   :  { %v519_v50 = vpop.f32.mrf.mxu1 }
 0x2f1   :  { %v521_v51 = vpop.f32.mrf.mxu1 }
 0x2f2   :  { %v536_v57 = vpack.c.bf16 %v521_v51, %v517_v49 }
 0x2f3   :  { %v523_v52 = vpop.f32.mrf.mxu1 }
 0x2f5   :  { %v527_v53 = vpop.f32.mrf.mxu1 }
 0x2f7   :  { %v529_v54 = vpop.f32.mrf.mxu1 }
 0x2f9   :  { %v531_v55 = vpop.f32.mrf.mxu1 }
 0x2fa   :  { %v537_v56 = vpack.c.bf16 %v531_v55, %v527_v53 }
 0x2fb   :  { %v533_v1 = vpop.f32.mrf.mxu1 }
 0x2fc   :  { %727 = vmatprep.subr.bf16.mxu0 %v537_v56 }
 0x2fd   :  { %728 = vmatpush3.bf16.msra.mxu0 %v537_v56 }
 0x2fe   :  { %729 = vmatprep.subr.bf16.mxu0 %v536_v57 }
 0x301   :  { %730 = vmatpush3.bf16.msra.mxu0 %v536_v57 }
 0x304   :  { %732 = vmatmul.mubr.msk.bf16.vlgmr.msra.gmra.mxu0 %vm267_vm0, %v986_v29 }
 0x3c4   :  { %v733_v0 = vpop.f32.mrf.mxu0 }
 0x3c5   :  { %v581_v62 = vadd.f32 %v733_v0, %v529_v54 }
 0x3c6   :  { %v572_v58 = vpop.f32.mrf.mxu0 }
 0x3c7   :  { %v573_v60 = vadd.f32 %v572_v58, %v519_v50  ;;  %v601_v6 = vmul.f32 %v581_v62, %v581_v62 }
 0x3c8   :  { %v734_v59 = vpop.f32.mrf.mxu0 }
 0x3c9   :  { %v599_v2 = vmul.f32 %v573_v60, %v573_v60  ;;  %v584_v3 = vadd.f32 %v734_v59, %v533_v1 }
 0x3ca   :  { %v575_v61 = vpop.f32.mrf.mxu0 }
 0x3cb   :  { %v576_v63 = vadd.f32 %v575_v61, %v523_v52  ;;  %v602_v9 = vmul.f32 %v584_v3, %v584_v3 }
 0x3cd   :  { %v589_v4 = vadd.f32 %v576_v63, %v573_v60  ;;  %v600_v5 = vmul.f32 %v576_v63, %v576_v63 }
 0x3cf   :  { %v590_v7 = vadd.f32 %v589_v4, %v581_v62  ;;  %v603_v8 = vadd.f32 %v600_v5, %v599_v2 }
 0x3d1   :  { %v591_v10 = vadd.f32 %v590_v7, %v584_v3  ;;  %v604_v11 = vadd.f32 %v603_v8, %v601_v6 }
 0x3d3   :  { %v592_v12 = vrot.slane %v591_v10, 4  ;;  %v605_v29 = vadd.f32 %v604_v11, %v602_v9 }
 0x3d5   :  { %v593_v13 = vadd.f32 %v592_v12, %v591_v10  ;;  %v606_v14 = vrot.slane %v605_v29, 4 }
 0x3d7   :  { %v594_v15 = vrot.slane %v593_v13, 2  ;;  %v607_v16 = vadd.f32 %v606_v14, %v605_v29 }
 0x3d9   :  { %v595_v17 = vadd.f32 %v594_v15, %v593_v13  ;;  %v608_v18 = vrot.slane %v607_v16, 2 }
 0x3db   :  { %v596_v19 = vrot.slane %v595_v17, 1  ;;  %v609_v20 = vadd.f32 %v608_v18, %v607_v16 }
 0x3dd   :  { %v597_v21 = vadd.f32 %v596_v19, %v595_v17  ;;  %v610_v23 = vrot.slane %v609_v20, 1 }
 0x3df   :  { %v598_v24 = vmul.f32 0.03125, %v597_v21  ;;  %v611_v25 = vadd.f32 %v610_v23, %v609_v20 }
 0x3e1   :  { %v612_v26 = vmul.f32 0.03125, %v611_v25  ;;  %v613_v27 = vmul.f32 %v598_v24, %v598_v24 }
 0x3e3   :  { %v614_v28 = vsub.f32 %v612_v26, %v613_v27 }
 0x3e5   :  { %v615_v30 = vadd.f32 1e-05, %v614_v28 }
 0x3e7   :  { %799 = vrsqrt.f32 %v615_v30 }
 0x3f4   :  { %v800_v32 = vpop.eup %799 }
 0x3f5   :  { %v617_v33 = vmul.f32 %v800_v32, %v587_v31 }
 0x3f7   :  { %v618_v35 = vmul.f32 %v617_v33, %v598_v24  ;;  %v624_v36 = vrot.slane %v617_v33, %v994_v22 }
 0x3f9   :  { %v619_v37 = vsub.f32 %v588_v34, %v618_v35  ;;  %v627_v38 = vmul.f32 %v624_v36, %v576_v63  ;;  %v626_v40 = vmul.f32 %v624_v36, %v573_v60  ;;  %v628_v41 = vmul.f32 %v624_v36, %v581_v62 }
 0x3fa   :  { %v629_v42 = vmul.f32 %v624_v36, %v584_v3 }
 0x3fb   :  { %v634_v39 = vrot.slane %v619_v37, %v994_v22 }
 0x3fd   :  { %v637_v43 = vadd.f32 %v634_v39, %v627_v38  ;;  %v636_v44 = vadd.f32 %v634_v39, %v626_v40  ;;  %v638_v45 = vadd.f32 %v634_v39, %v628_v41  ;;  %v639_v46 = vadd.f32 %v634_v39, %v629_v42 }
 0x3ff   :  { %v641_v47 = vmul.f32 0.1, %v637_v43  ;;  %v640_v48 = vmul.f32 0.1, %v636_v44  ;;  %v642_v49 = vmul.f32 0.1, %v638_v45 }
 0x400   :  { %v643_v50 = vmul.f32 0.1, %v639_v46 }
 0x401   :  { %v645_v51 = vmax.f32 %v637_v43, %v641_v47  ;;  %v644_v52 = vmax.f32 %v636_v44, %v640_v48  ;;  %v646_v53 = vmax.f32 %v638_v45, %v642_v49 }
 0x402   :  { %v647_v54 = vmax.f32 %v639_v46, %v643_v50 }
 0x403   :  { %649 = vst [vmem:[#allocation10 + $0x8] sm:$0xff] %v645_v51  ;;  %648 = vst [vmem:[#allocation10] sm:$0xff] %v644_v52 }
 0x404   :  { %650 = vst [vmem:[#allocation10 + $0x10] sm:$0xff] %v646_v53  ;;  %651 = vst [vmem:[#allocation10 + $0x18] sm:$0xff] %v647_v54 }
 0x405   :  { %892 = shalt.err (!%p889_p10)
}
 0x406   :  { %663 = dma.vmem_to_hbm [thread:$0]  %s658_s9, 512, %s1026_s8, [#allocation4], %s914_s1, %s914_s1, %s915_s20  }
 0x407   :  { %907 = dma.done.wait [#allocation4], 512  }
 0x408   :  { %908 = vsyncadd [#allocation4], 4294966784 }
 0x409   :  { %667 = vsyncpa [#allocation3], 1 }
 0x40a   :  { %668 = vsyncpa [#allocation6], 1 }
 0x40b   :  { %669 = vsyncpa [#allocation9], 1 }
 0x40c   :  { %670 = vsyncpa [#allocation4], 1 }

</bundles_post_ra>
